<compile_context>
chip_gen: v5e
topology: v5e:2x2
jax: 0.10.0
libtpu: 0.0.40
codegen_flags: <defaults>
</compile_context>

<pallas_src>
import jax
import jax.numpy as jnp
from jax.experimental import pallas as pl
from jax.experimental.pallas import tpu as pltpu

NUM_ACTIONS = 19
# gfootball action ids for the 8 movement directions
A_LEFT, A_TOP_LEFT, A_TOP, A_TOP_RIGHT = 1, 2, 3, 4
A_RIGHT, A_BOTTOM_RIGHT, A_BOTTOM, A_BOTTOM_LEFT = 5, 6, 7, 8

_LANE_TILE = 32768   # lanes per grid step in the tiled (large-B) path
_SMALL_MAX = 32768   # up to this many padded lanes: gridless single VMEM block
_PAD_TO = 1024       # batch padding granularity (decoupled from the DMA tile)


def _round_up(x, m):
    return ((x + m - 1) // m) * m


def _padded_batch(b):
    return max(_round_up(b, _PAD_TO), _PAD_TO)


def _bot_kernel(d_ref, act_ref):
    # d_ref: (2, TB) f32, rows = (ball_x - player_x, ball_y - player_y)
    dx = d_ref[0:1, :]                              # (1, TB)
    dy = d_ref[1:2, :]

    adx = jnp.abs(dx)
    ady = jnp.abs(dy)

    # 8-way compass binning: a move is "pure horizontal/vertical" when the
    # dominant component exceeds tan(67.5 deg) ~= 2.41421356 x the other one,
    # otherwise it is diagonal.  All f32 on the VPU.
    T = 2.41421356
    horiz = adx >= T * ady
    vert = ady >= T * adx
    right = dx > 0.0
    down = dy > 0.0

    act_h = jnp.where(right, A_RIGHT, A_LEFT)
    act_v = jnp.where(down, A_BOTTOM, A_TOP)
    act_d = jnp.where(
        right,
        jnp.where(down, A_BOTTOM_RIGHT, A_TOP_RIGHT),
        jnp.where(down, A_BOTTOM_LEFT, A_TOP_LEFT),
    )
    action = jnp.where(horiz, act_h, jnp.where(vert, act_v, act_d))

    # (1, TB) lane-dense int32 store (4 B/lane) - the only kernel output.
    act_ref[...] = action.astype(jnp.int32)


def _run_bot_kernel(d):
    """d: (2, Bp) f32 with Bp a multiple of 128; returns (1, Bp) int32 actions."""
    bp = d.shape[1]
    assert bp % 128 == 0
    out_shape = jax.ShapeDtypeStruct((1, bp), jnp.int32)

    if bp <= _SMALL_MAX:
        # Gridless path: whole arrays as single VMEM blocks, no pipelining
        # prologue/epilogue or per-step overhead (nothing to overlap anyway).
        return pl.pallas_call(
            _bot_kernel,
            out_shape=out_shape,
            in_specs=[pl.BlockSpec(memory_space=pltpu.MemorySpace.VMEM)],
            out_specs=pl.BlockSpec(memory_space=pltpu.MemorySpace.VMEM),
        )(d)

    # Tiled path: 32K-lane steps (~256 KiB in / 128 KiB out per step, trivially
    # double-buffered in VMEM on every generation).  bp > _SMALL_MAX guarantees
    # at least 2 grid steps, so v7x's two TensorCores both get work.  pl.cdiv
    # handles a partial last block (padding is masked by Pallas).
    grid = (pl.cdiv(bp, _LANE_TILE),)
    return pl.pallas_call(
        _bot_kernel,
        out_shape=out_shape,
        grid=grid,
        in_specs=[pl.BlockSpec((2, _LANE_TILE), lambda i: (0, i))],
        out_specs=pl.BlockSpec((1, _LANE_TILE), lambda i: (0, i)),
        compiler_params=pltpu.CompilerParams(
            dimension_semantics=("parallel",)
        ),
    )(d)


@jax.jit
def _forward_arrays(left_team, active, ball):
    """left_team: (B, N, 2) f32, active: (B,) i32, ball: (B, >=2) f32."""
    b = left_team.shape[0]
    # On-device gather of the controlled player's (x, y) - no host sync.
    player_pos = left_team[jnp.arange(b), active, :2].astype(jnp.float32)  # (B, 2)
    ball_pos = ball[:, :2].astype(jnp.float32)                             # (B, 2)

    # Pack lane-dense (2, B) slab of deltas, pad lanes to the 1024 granularity
    # only (never to a tile multiple).
    d = (ball_pos - player_pos).T                                          # (2, B)
    bp = _padded_batch(b)
    d = jnp.pad(d, ((0, 0), (0, bp - b)))

    act = _run_bot_kernel(d)                                               # (1, bp)
    action = act[0, :b]                                                    # (B,)
    # One-hot logits produced exactly once, directly in their final (B, 19)
    # layout by XLA (keeps the 19-wide dim out of the kernel's lane axis).
    logit = jax.nn.one_hot(action, NUM_ACTIONS, dtype=jnp.float32)         # (B, 19)
    return action, logit


def football_kaggle_5th_place_forward(data):
    """Mirror of FootballKaggle5thPlaceModel.forward.

    `data` is a list of per-env observation dicts (jnp-array valued).  The
    dict plumbing stays in Python; all per-element compute (player gather,
    direction heuristic, one-hot logits) runs on device in one jitted call.
    """
    lts, acts, balls = [], [], []
    for d in data:
        # same "is this a real observation" gate as the torch module
        if d.get("steps_left", None) is None:
            continue
        lts.append(jnp.asarray(d["left_team"], jnp.float32))
        acts.append(jnp.asarray(d["active"], jnp.int32).reshape(-1)[0])
        balls.append(jnp.asarray(d["ball"], jnp.float32))

    left_team = jnp.stack(lts)     # (B, N_PLAYERS, 2)
    active = jnp.stack(acts)       # (B,)
    ball = jnp.stack(balls)        # (B, 3)

    action, logit = _forward_arrays(left_team, active, ball)
    return {"action": action, "logit": logit}


def _reference_actions_from_d(dx, dy):
    """Pure-jnp reference of the direction heuristic (for testing)."""
    adx, ady = jnp.abs(dx), jnp.abs(dy)
    T = 2.41421356
    horiz = adx >= T * ady
    vert = ady >= T * adx
    right = dx > 0.0
    down = dy > 0.0
    act_h = jnp.where(right, A_RIGHT, A_LEFT)
    act_v = jnp.where(down, A_BOTTOM, A_TOP)
    act_d = jnp.where(
        right,
        jnp.where(down, A_BOTTOM_RIGHT, A_TOP_RIGHT),
        jnp.where(down, A_BOTTOM_LEFT, A_TOP_LEFT),
    )
    return jnp.where(horiz, act_h, jnp.where(vert, act_v, act_d)).astype(jnp.int32)


def _reference_actions(player_pos, ball_pos):
    return _reference_actions_from_d(
        ball_pos[:, 0] - player_pos[:, 0], ball_pos[:, 1] - player_pos[:, 1]
    )


if __name__ == "__main__":
    key = jax.random.PRNGKey(0)
    B = 8           # batch of env observations
    N_PLAYERS = 11  # left-team size in gfootball raw obs

    data = []
    for i in range(B):
        key, k1, k2, k3 = jax.random.split(key, 4)
        left_team = jax.random.uniform(
            k1, (N_PLAYERS, 2), jnp.float32, minval=-1.0, maxval=1.0
        ) * jnp.array([1.0, 0.42], jnp.float32)
        ball = jnp.concatenate(
            [
                jax.random.uniform(k2, (2,), jnp.float32, minval=-1.0, maxval=1.0)
                * jnp.array([1.0, 0.42], jnp.float32),
                jnp.zeros((1,), jnp.float32),
            ]
        )
        active = jax.random.randint(k3, (1,), 0, N_PLAYERS, jnp.int32)
        data.append(
            {
                "steps_left": jnp.array([3001 - i], jnp.int32),
                "active": active,
                "left_team": left_team,
                "ball": ball,
            }
        )

    out = football_kaggle_5th_place_forward(data)
    jax.block_until_ready(out)

    assert out["action"].shape == (B,)
    assert out["logit"].shape == (B, NUM_ACTIONS)
    # logits must be exactly one-hot on the chosen action
    assert bool(jnp.all(jnp.sum(out["logit"], axis=-1) == 1.0))
    assert bool(
        jnp.all(jnp.argmax(out["logit"], axis=-1).astype(jnp.int32) == out["action"])
    )

    # check against a pure-jnp reference of the direction heuristic
    lt = jnp.stack([d["left_team"] for d in data])
    ac = jnp.stack([d["active"].reshape(-1)[0] for d in data]).astype(jnp.int32)
    bl = jnp.stack([d["ball"] for d in data])
    pp = lt[jnp.arange(B), ac, :2]
    bpos = bl[:, :2]
    assert bool(jnp.all(_reference_actions(pp, bpos) == out["action"]))

    # exercise the tiled large-B path directly at the packed-array level,
    # including a partial (cdiv-masked) last block: 32768 + 1024 lanes.
    n_big = _LANE_TILE + _PAD_TO
    d_big = jax.random.uniform(
        jax.random.PRNGKey(1), (2, n_big), jnp.float32, minval=-1.0, maxval=1.0
    )
    act_big = _run_bot_kernel(d_big)
    jax.block_until_ready(act_big)
    assert act_big.shape == (1, n_big)
    ref_big = _reference_actions_from_d(d_big[0], d_big[1])
    assert bool(jnp.all(act_big[0] == ref_big))

    print("KERNEL_OK")
</pallas_src>

<mosaic_0001>
module attributes {stable_mosaic.version = 11 : i64} {
  func.func @_bot_kernel(%arg0: memref<2x1024xf32, #tpu.memory_space<vmem>>, %arg1: memref<1x1024xi32, #tpu.memory_space<vmem>>) attributes {dimension_semantics = [], scalar_prefetch = 0 : i64, scratch_operands = 0 : i64, tpu.core_type = #tpu.core_type<tc>} {
    %c0 = arith.constant 0 : index
    %c0_0 = arith.constant 0 : index
    %0 = vector.load %arg0[%c0, %c0_0] : memref<2x1024xf32, #tpu.memory_space<vmem>>, vector<1x1024xf32>
    %c1 = arith.constant 1 : index
    %c0_1 = arith.constant 0 : index
    %1 = vector.load %arg0[%c1, %c0_1] : memref<2x1024xf32, #tpu.memory_space<vmem>>, vector<1x1024xf32>
    %2 = math.absf %0 : vector<1x1024xf32>
    %3 = math.absf %1 : vector<1x1024xf32>
    %cst = arith.constant 2.41421366 : f32
    %4 = vector.broadcast %cst : f32 to vector<1x1024xf32>
    %5 = arith.mulf %4, %3 : vector<1x1024xf32>
    %6 = arith.cmpf oge, %2, %5 : vector<1x1024xf32>
    %cst_2 = arith.constant 2.41421366 : f32
    %7 = vector.broadcast %cst_2 : f32 to vector<1x1024xf32>
    %8 = arith.mulf %7, %2 : vector<1x1024xf32>
    %9 = arith.cmpf oge, %3, %8 : vector<1x1024xf32>
    %cst_3 = arith.constant 0.000000e+00 : f32
    %10 = vector.broadcast %cst_3 : f32 to vector<1x1024xf32>
    %11 = arith.cmpf ogt, %0, %10 : vector<1x1024xf32>
    %cst_4 = arith.constant 0.000000e+00 : f32
    %12 = vector.broadcast %cst_4 : f32 to vector<1x1024xf32>
    %13 = arith.cmpf ogt, %1, %12 : vector<1x1024xf32>
    %c5_i32 = arith.constant 5 : i32
    %c1_i32 = arith.constant 1 : i32
    %14 = vector.broadcast %c5_i32 : i32 to vector<1x1024xi32>
    %15 = vector.broadcast %c1_i32 : i32 to vector<1x1024xi32>
    %16 = arith.select %11, %14, %15 : vector<1x1024xi1>, vector<1x1024xi32>
    %c7_i32 = arith.constant 7 : i32
    %c3_i32 = arith.constant 3 : i32
    %17 = vector.broadcast %c7_i32 : i32 to vector<1x1024xi32>
    %18 = vector.broadcast %c3_i32 : i32 to vector<1x1024xi32>
    %19 = arith.select %13, %17, %18 : vector<1x1024xi1>, vector<1x1024xi32>
    %c6_i32 = arith.constant 6 : i32
    %c4_i32 = arith.constant 4 : i32
    %20 = vector.broadcast %c6_i32 : i32 to vector<1x1024xi32>
    %21 = vector.broadcast %c4_i32 : i32 to vector<1x1024xi32>
    %22 = arith.select %13, %20, %21 : vector<1x1024xi1>, vector<1x1024xi32>
    %c8_i32 = arith.constant 8 : i32
    %c2_i32 = arith.constant 2 : i32
    %23 = vector.broadcast %c8_i32 : i32 to vector<1x1024xi32>
    %24 = vector.broadcast %c2_i32 : i32 to vector<1x1024xi32>
    %25 = arith.select %13, %23, %24 : vector<1x1024xi1>, vector<1x1024xi32>
    %26 = arith.select %11, %22, %25 : vector<1x1024xi1>, vector<1x1024xi32>
    %27 = arith.select %9, %19, %26 : vector<1x1024xi1>, vector<1x1024xi32>
    %28 = arith.select %6, %16, %27 : vector<1x1024xi1>, vector<1x1024xi32>
    %c0_5 = arith.constant 0 : index
    %c0_6 = arith.constant 0 : index
    %29 = vector.load %arg1[%c0_5, %c0_6] : memref<1x1024xi32, #tpu.memory_space<vmem>>, vector<1x1024xi32>
    tpu.vector_store %arg1[%c0_5, %c0_6], %28 {strides = array<i32>} : memref<1x1024xi32, #tpu.memory_space<vmem>>, vector<1x1024xi32>,
    return
  }
}

</mosaic_0001>

<bundles_post_ra>
// kernel: _forward_arrays.1
= control target key start
LH: loop header
LB: loop body
LE: loop exit
PB: predicated region body
PF: predicated region fallthrough
CT: control target
= control target key end

     0   :  { %v36_v4 = vmov 4   ;;  %v37_v6 = vmov 2   ;;  %v38_v10 = vmov 3   ;;  %v39_v13 = vmov 1   ;;  %s59_s0 = inlined_call_operand.vmem [shape: f32[2,1024], index: 0, kind: input, shape index: {}]   ;;  %s60_s1 = inlined_call_operand.vmem [shape: s32[1,1024], index: 1, kind: output, shape index: {}]  }
   0x1   :  { %v8_v0 = vld [vmem:[%s59_s0] ss:$2 sm:$0xff]  ;;  %v31_v1 = vld [vmem:[%s59_s0 + $0x1] ss:$2 sm:$0xff] }
   0x2   :  { %v11_v2 = vand.u32 2147483647, %v8_v0  ;;  %v12_v3 = vand.u32 2147483647, %v31_v1  ;;  %vm17_vm0 = vcmp.gt.f32.partialorder %v8_v0, 0.0  ;;  %vm18_vm1 = vcmp.gt.f32.partialorder %v31_v1, 0.0 }
   0x3   :  { %v21_v5 = vsel %vm18_vm1, 6, %v36_v4  ;;  %v22_v7 = vsel %vm18_vm1, 8, %v37_v6  ;;  %v20_v11 = vsel %vm18_vm1, 7, %v38_v10  ;;  %v19_v14 = vsel %vm17_vm0, 5, %v39_v13 }
   0x4   :  { %v13_v8 = vmul.f32 2.4142137, %v12_v3  ;;  %v15_v9 = vmul.f32 2.4142137, %v11_v2  ;;  %v23_v12 = vsel %vm17_vm0, %v21_v5, %v22_v7 }
   0x6   :  { %vm14_vm2 = vcmp.ge.f32.partialorder %v11_v2, %v13_v8  ;;  %vm16_vm3 = vcmp.ge.f32.partialorder %v12_v3, %v15_v9 }
   0x7   :  { %v24_v15 = vsel %vm16_vm3, %v20_v11, %v23_v12 }
   0x8   :  { %v25_v16 = vsel %vm14_vm2, %v19_v14, %v24_v15 }
   0x9   :  { %26 = vst [vmem:[%s60_s1] sm:$0xff] %v25_v16 }

</bundles_post_ra>
